<compile_context>
chip_gen: v5e
topology: v5e:2x2
jax: 0.10.0
libtpu: 0.0.40
codegen_flags: <defaults>
</compile_context>

<pallas_src>
import functools

import jax
import jax.numpy as jnp
from jax import lax
from jax.experimental import pallas as pl
from jax.experimental.pallas import tpu as pltpu


def _conv_same(t, w_ref, b_ref, *, pad):
    """Stride-1 zero-padded Conv1d + (folded-BN) bias + ReLU6 on a (L, Cin) bf16 tile.

    Each tap k reads a static sublane slice of the padded tile; only the K matmuls
    use the MXU, accumulating in f32.
    """
    k_size, _, c_out = w_ref.shape
    l_len, c_in = t.shape
    if pad > 0:
        zp = jnp.zeros((pad, c_in), t.dtype)
        tp = jnp.concatenate([zp, t, zp], axis=0)          # (L + 2*pad, Cin)
    else:
        tp = t
    acc = jnp.zeros((l_len, c_out), jnp.float32)
    for k in range(k_size):                                 # unrolled taps
        acc = acc + jnp.dot(tp[k:k + l_len], w_ref[k],
                            preferred_element_type=jnp.float32)
    return jnp.clip(acc + b_ref[0], 0.0, 6.0)               # bias + ReLU6


def _inception_b_kernel(x_ref, wred_ref, bred_ref, w2b_ref, b2b_ref,
                        w3b_ref, b3b_ref, w3c_ref, b3c_ref, w4_ref, b4_ref,
                        o1_ref, o2_ref, o3_ref, o4_ref, *, c1, c2r):
    x = x_ref[0]                                            # (L, Cin), bf16
    l_len = x.shape[0]

    # --- fused 1x1 reduce convs: branch1 + branch2a + branch3a read x once ---
    red = jnp.dot(x, wred_ref[0], preferred_element_type=jnp.float32)
    red = jnp.clip(red + bred_ref[0], 0.0, 6.0)             # (L, c1 + c2r + c3r)
    o1_ref[0] = red[:, :c1].astype(o1_ref.dtype)            # branch1 output
    t2 = red[:, c1:c1 + c2r].astype(jnp.bfloat16)           # branch2 reduce
    t3 = red[:, c1 + c2r:].astype(jnp.bfloat16)             # branch3 reduce

    # --- branch2: 1x1 -> k7 pad3 ---
    o2_ref[0] = _conv_same(t2, w2b_ref, b2b_ref, pad=3).astype(o2_ref.dtype)

    # --- branch3: 1x1 -> k7 pad3 -> k7 pad3 ---
    t3b = _conv_same(t3, w3b_ref, b3b_ref, pad=3).astype(jnp.bfloat16)
    o3_ref[0] = _conv_same(t3b, w3c_ref, b3c_ref, pad=3).astype(o3_ref.dtype)

    # --- branch4: MaxPool1d(k=3, s=1, p=1) (-inf padding) -> 1x1 conv ---
    neg = jnp.full((1, x.shape[1]), -jnp.inf, x.dtype)
    xp = jnp.concatenate([neg, x, neg], axis=0)             # (L + 2, Cin)
    pooled = jnp.maximum(jnp.maximum(xp[0:l_len], xp[1:l_len + 1]),
                         xp[2:l_len + 2])
    out4 = jnp.dot(pooled, w4_ref[0], preferred_element_type=jnp.float32)
    o4_ref[0] = jnp.clip(out4 + b4_ref[0], 0.0, 6.0).astype(o4_ref.dtype)


def _fold_bn(w, scale, bias):
    """One-time fold of the BN scale into the conv weight; cast weight to bf16."""
    w_f = (w * scale.reshape(1, 1, -1)).astype(jnp.bfloat16)   # (K, Cin, Cout)
    b_f = bias.reshape(1, -1).astype(jnp.float32)              # (1, Cout)
    return w_f, b_f


def inception_v3_module_b(x_ncl, params):
    """x_ncl: (N, C_in, L) float32 (PyTorch layout).

    params: 7 tuples (W (K, Cin, Cout), scale (1, Cout), bias (1, Cout)) for
    [branch1.1x1, branch2.1x1, branch2.k7p3, branch3.1x1, branch3.k7p3a,
     branch3.k7p3b, branch4.1x1]; BN running stats + conv bias pre-folded.
    Returns (N, C1 + C2 + C2 + C4, L) matching torch.cat([o1, o2, o3, o4], dim=1).
    """
    n, c_in, seq_len = x_ncl.shape
    p1, p2a, p2b, p3a, p3b, p3c, p4 = params

    w1, b1 = _fold_bn(*p1)
    w2a, b2a = _fold_bn(*p2a)
    w2b, b2b = _fold_bn(*p2b)
    w3a, b3a = _fold_bn(*p3a)
    w3b, b3b = _fold_bn(*p3b)
    w3c, b3c = _fold_bn(*p3c)
    w4, b4 = _fold_bn(*p4)

    c1, c2r, c3r = w1.shape[2], w2a.shape[2], w3a.shape[2]
    c2, c2b3, c4 = w2b.shape[2], w3c.shape[2], w4.shape[2]

    # Fuse the three 1x1 reduce convs (all read x) into a single matmul.
    w_red = jnp.concatenate([w1, w2a, w3a], axis=2)         # (1, Cin, c1+c2r+c3r)
    b_red = jnp.concatenate([b1, b2a, b3a], axis=1)         # (1, c1+c2r+c3r)

    x_nlc = jnp.transpose(x_ncl, (0, 2, 1)).astype(jnp.bfloat16)   # (N, L, Cin)

    kernel = functools.partial(_inception_b_kernel, c1=c1, c2r=c2r)

    operands = [x_nlc, w_red, b_red, w2b, b2b, w3b, b3b, w3c, b3c, w4, b4]
    in_specs = [pl.BlockSpec((1, seq_len, c_in), lambda i: (i, 0, 0))]
    for a in operands[1:]:
        if a.ndim == 3:
            in_specs.append(pl.BlockSpec(a.shape, lambda i: (0, 0, 0)))
        else:
            in_specs.append(pl.BlockSpec(a.shape, lambda i: (0, 0)))

    out_shape = (
        jax.ShapeDtypeStruct((n, seq_len, c1), jnp.float32),
        jax.ShapeDtypeStruct((n, seq_len, c2), jnp.float32),
        jax.ShapeDtypeStruct((n, seq_len, c2b3), jnp.float32),
        jax.ShapeDtypeStruct((n, seq_len, c4), jnp.float32),
    )
    out_specs = (
        pl.BlockSpec((1, seq_len, c1), lambda i: (i, 0, 0)),
        pl.BlockSpec((1, seq_len, c2), lambda i: (i, 0, 0)),
        pl.BlockSpec((1, seq_len, c2b3), lambda i: (i, 0, 0)),
        pl.BlockSpec((1, seq_len, c4), lambda i: (i, 0, 0)),
    )

    o1, o2, o3, o4 = pl.pallas_call(
        kernel,
        out_shape=out_shape,
        grid=(n,),
        in_specs=in_specs,
        out_specs=out_specs,
        compiler_params=pltpu.CompilerParams(
            dimension_semantics=("parallel",),
            vmem_limit_bytes=32 * 1024 * 1024),
    )(*operands)

    out_nlc = jnp.concatenate([o1, o2, o3, o4], axis=2)     # XLA fuses with transpose
    return jnp.transpose(out_nlc, (0, 2, 1))                # back to (N, C_out, L)


def make_conv_bn_params(key, c_in, c_out, k, eps=1e-5):
    """Deterministic Conv1d + BatchNorm1d params, BN folded to (scale, bias)."""
    kw, kb, kg, kbe, km, kv = jax.random.split(key, 6)
    w = 0.1 * jax.random.normal(kw, (k, c_in, c_out), jnp.float32)
    conv_b = 0.1 * jax.random.normal(kb, (c_out,), jnp.float32)
    gamma = 1.0 + 0.1 * jax.random.normal(kg, (c_out,), jnp.float32)
    beta = 0.1 * jax.random.normal(kbe, (c_out,), jnp.float32)
    run_mean = 0.1 * jax.random.normal(km, (c_out,), jnp.float32)
    run_var = jnp.abs(jax.random.normal(kv, (c_out,), jnp.float32)) + 0.5
    scale = gamma / jnp.sqrt(run_var + eps)
    bias = beta + scale * (conv_b - run_mean)
    return (w, scale.reshape(1, c_out), bias.reshape(1, c_out))


def reference(x_ncl, params):
    """Pure-JAX reference (NCL layout) using the same folded bf16 weights."""
    p1, p2a, p2b, p3a, p3b, p3c, p4 = params
    w1, b1 = _fold_bn(*p1)
    w2a, b2a = _fold_bn(*p2a)
    w2b, b2b = _fold_bn(*p2b)
    w3a, b3a = _fold_bn(*p3a)
    w3b, b3b = _fold_bn(*p3b)
    w3c, b3c = _fold_bn(*p3c)
    w4, b4 = _fold_bn(*p4)

    xb = x_ncl.astype(jnp.bfloat16)

    def cbr(t, w, b, pad):
        wo = jnp.transpose(w, (2, 1, 0))                     # (Cout, Cin, K)
        y = lax.conv_general_dilated(
            t.astype(jnp.bfloat16), wo, (1,), [(pad, pad)],
            dimension_numbers=('NCH', 'OIH', 'NCH'),
            preferred_element_type=jnp.float32)
        return jnp.clip(y + b.reshape(1, -1, 1), 0.0, 6.0)

    o1 = cbr(xb, w1, b1, 0)
    o2 = cbr(cbr(xb, w2a, b2a, 0), w2b, b2b, 3)
    o3 = cbr(cbr(cbr(xb, w3a, b3a, 0), w3b, b3b, 3), w3c, b3c, 3)
    pool = lax.reduce_window(xb, jnp.asarray(-jnp.inf, dtype=xb.dtype), lax.max,
                             (1, 1, 3), (1, 1, 1), [(0, 0), (0, 0), (1, 1)])
    o4 = cbr(pool, w4, b4, 0)
    return jnp.concatenate([o1, o2, o3, o4], axis=1)


if __name__ == "__main__":
    key = jax.random.PRNGKey(0)
    ks = jax.random.split(key, 8)

    # Small shapes consistent with the module. Note: the original PyTorch module
    # never uses out_channels3 (branch3's last conv outputs out_channels2).
    N, C_IN, L = 2, 8, 16
    C1, C2R, C2, C3R, C4 = 8, 4, 8, 4, 8

    x = jax.random.normal(ks[0], (N, C_IN, L), jnp.float32)
    params = [
        make_conv_bn_params(ks[1], C_IN, C1, 1),    # branch1: 1x1
        make_conv_bn_params(ks[2], C_IN, C2R, 1),   # branch2: 1x1 reduce
        make_conv_bn_params(ks[3], C2R, C2, 7),     # branch2: k7 pad3
        make_conv_bn_params(ks[4], C_IN, C3R, 1),   # branch3: 1x1 reduce
        make_conv_bn_params(ks[5], C3R, C3R, 7),    # branch3: k7 pad3 (reduce->reduce)
        make_conv_bn_params(ks[6], C3R, C2, 7),     # branch3: k7 pad3 (-> out_channels2)
        make_conv_bn_params(ks[7], C_IN, C4, 1),    # branch4: 1x1 after maxpool
    ]

    out = jax.block_until_ready(inception_v3_module_b(x, params))
    ref = reference(x, params)

    assert out.shape == (N, C1 + 2 * C2 + C4, L), out.shape
    max_err = float(jnp.abs(out - ref).max())
    assert jnp.allclose(out, ref, atol=2e-2, rtol=2e-2), max_err
    print("KERNEL_OK")
</pallas_src>

<mosaic_0001>
module attributes {stable_mosaic.version = 11 : i64} {
  func.func @_inception_b_kernel(%arg0: i32, %arg1: memref<1x16x8xbf16, #tpu.memory_space<vmem>>, %arg2: memref<1x8x16xbf16, #tpu.memory_space<vmem>>, %arg3: memref<1x16xf32, #tpu.memory_space<vmem>>, %arg4: memref<7x4x8xbf16, #tpu.memory_space<vmem>>, %arg5: memref<1x8xf32, #tpu.memory_space<vmem>>, %arg6: memref<7x4x4xbf16, #tpu.memory_space<vmem>>, %arg7: memref<1x4xf32, #tpu.memory_space<vmem>>, %arg8: memref<7x4x8xbf16, #tpu.memory_space<vmem>>, %arg9: memref<1x8xf32, #tpu.memory_space<vmem>>, %arg10: memref<1x8x8xbf16, #tpu.memory_space<vmem>>, %arg11: memref<1x8xf32, #tpu.memory_space<vmem>>, %arg12: memref<1x16x8xf32, #tpu.memory_space<vmem>>, %arg13: memref<1x16x8xf32, #tpu.memory_space<vmem>>, %arg14: memref<1x16x8xf32, #tpu.memory_space<vmem>>, %arg15: memref<1x16x8xf32, #tpu.memory_space<vmem>>) attributes {dimension_semantics = [#tpu.dimension_semantics<parallel>], iteration_bounds = array<i64: 2>, scalar_prefetch = 0 : i64, scratch_operands = 0 : i64, tpu.core_type = #tpu.core_type<tc>, window_params = [{transform_indices = @transform_0, window_bounds = array<i64: 1, 16, 8>}, {pipeline_mode = #tpu.pipeline_mode<synchronous>, transform_indices = @transform_1, window_bounds = array<i64: 1, 8, 16>}, {pipeline_mode = #tpu.pipeline_mode<synchronous>, transform_indices = @transform_2, window_bounds = array<i64: 1, 16>}, {pipeline_mode = #tpu.pipeline_mode<synchronous>, transform_indices = @transform_3, window_bounds = array<i64: 7, 4, 8>}, {pipeline_mode = #tpu.pipeline_mode<synchronous>, transform_indices = @transform_4, window_bounds = array<i64: 1, 8>}, {pipeline_mode = #tpu.pipeline_mode<synchronous>, transform_indices = @transform_5, window_bounds = array<i64: 7, 4, 4>}, {pipeline_mode = #tpu.pipeline_mode<synchronous>, transform_indices = @transform_6, window_bounds = array<i64: 1, 4>}, {pipeline_mode = #tpu.pipeline_mode<synchronous>, transform_indices = @transform_7, window_bounds = array<i64: 7, 4, 8>}, {pipeline_mode = #tpu.pipeline_mode<synchronous>, transform_indices = @transform_8, window_bounds = array<i64: 1, 8>}, {pipeline_mode = #tpu.pipeline_mode<synchronous>, transform_indices = @transform_9, window_bounds = array<i64: 1, 8, 8>}, {pipeline_mode = #tpu.pipeline_mode<synchronous>, transform_indices = @transform_10, window_bounds = array<i64: 1, 8>}, {transform_indices = @transform_11, window_bounds = array<i64: 1, 16, 8>}, {transform_indices = @transform_12, window_bounds = array<i64: 1, 16, 8>}, {transform_indices = @transform_13, window_bounds = array<i64: 1, 16, 8>}, {transform_indices = @transform_14, window_bounds = array<i64: 1, 16, 8>}]} {
    %c0 = arith.constant 0 : index
    %c0_0 = arith.constant 0 : index
    %c0_1 = arith.constant 0 : index
    %0 = vector.load %arg1[%c0, %c0_0, %c0_1] : memref<1x16x8xbf16, #tpu.memory_space<vmem>>, vector<1x16x8xbf16>
    %1 = vector.shape_cast %0 : vector<1x16x8xbf16> to vector<16x8xbf16>
    %c0_2 = arith.constant 0 : index
    %c0_3 = arith.constant 0 : index
    %c0_4 = arith.constant 0 : index
    %2 = vector.load %arg2[%c0_2, %c0_3, %c0_4] : memref<1x8x16xbf16, #tpu.memory_space<vmem>>, vector<1x8x16xbf16>
    %3 = vector.shape_cast %2 : vector<1x8x16xbf16> to vector<8x16xbf16>
    %cst = arith.constant dense<0.000000e+00> : vector<16x16xf32>
    %4 = tpu.matmul %1, %3, %cst {dimension_numbers = #tpu.dot_dimension_numbers<[1], [0], [0], [1], [0, 0, 1, 1], [], []>} : vector<16x8xbf16>, vector<8x16xbf16>, vector<16x16xf32> -> vector<16x16xf32>
    %c0_5 = arith.constant 0 : index
    %c0_6 = arith.constant 0 : index
    %5 = vector.load %arg3[%c0_5, %c0_6] : memref<1x16xf32, #tpu.memory_space<vmem>>, vector<1x16xf32>
    %6 = vector.shape_cast %5 : vector<1x16xf32> to vector<16xf32>
    %7 = vector.shape_cast %6 : vector<16xf32> to vector<1x16xf32>
    %8 = vector.broadcast %7 : vector<1x16xf32> to vector<16x16xf32>
    %9 = arith.addf %4, %8 : vector<16x16xf32>
    %cst_7 = arith.constant 0.000000e+00 : f32
    %cst_8 = arith.constant 6.000000e+00 : f32
    %10 = vector.broadcast %cst_7 : f32 to vector<16x16xf32>
    %11 = arith.maximumf %10, %9 : vector<16x16xf32>
    %12 = vector.broadcast %cst_8 : f32 to vector<16x16xf32>
    %13 = arith.minimumf %12, %11 : vector<16x16xf32>
    %14 = vector.extract_strided_slice %13 {offsets = [0, 0], sizes = [16, 8], strides = [1, 1]} : vector<16x16xf32> to vector<16x8xf32>
    %c0_9 = arith.constant 0 : index
    %c0_10 = arith.constant 0 : index
    %c0_11 = arith.constant 0 : index
    %15 = vector.load %arg12[%c0_9, %c0_10, %c0_11] : memref<1x16x8xf32, #tpu.memory_space<vmem>>, vector<1x16x8xf32>
    %16 = vector.shape_cast %15 : vector<1x16x8xf32> to vector<16x8xf32>
    %17 = vector.shape_cast %14 : vector<16x8xf32> to vector<1x16x8xf32>
    tpu.vector_store %arg12[%c0_9, %c0_10, %c0_11], %17 {strides = array<i32>} : memref<1x16x8xf32, #tpu.memory_space<vmem>>, vector<1x16x8xf32>,
    %18 = vector.extract_strided_slice %13 {offsets = [0, 8], sizes = [16, 4], strides = [1, 1]} : vector<16x16xf32> to vector<16x4xf32>
    %19 = arith.truncf %18 : vector<16x4xf32> to vector<16x4xbf16>
    %20 = vector.extract_strided_slice %13 {offsets = [0, 12], sizes = [16, 4], strides = [1, 1]} : vector<16x16xf32> to vector<16x4xf32>
    %21 = arith.truncf %20 : vector<16x4xf32> to vector<16x4xbf16>
    %cst_12 = arith.constant 0.000000e+00 : bf16
    %22 = vector.broadcast %cst_12 : bf16 to vector<3x4xbf16>
    %23 = tpu.concatenate %22, %19, %22 in 0 : vector<3x4xbf16>, vector<16x4xbf16>, vector<3x4xbf16> -> vector<22x4xbf16>
    %cst_13 = arith.constant 0.000000e+00 : f32
    %24 = vector.broadcast %cst_13 : f32 to vector<16x8xf32>
    %25 = vector.extract_strided_slice %23 {offsets = [0, 0], sizes = [16, 4], strides = [1, 1]} : vector<22x4xbf16> to vector<16x4xbf16>
    %c0_14 = arith.constant 0 : index
    %c0_15 = arith.constant 0 : index
    %c0_16 = arith.constant 0 : index
    %26 = vector.load %arg4[%c0_14, %c0_15, %c0_16] : memref<7x4x8xbf16, #tpu.memory_space<vmem>>, vector<1x4x8xbf16>
    %27 = vector.shape_cast %26 : vector<1x4x8xbf16> to vector<4x8xbf16>
    %cst_17 = arith.constant dense<0.000000e+00> : vector<16x8xf32>
    %28 = tpu.matmul %25, %27, %cst_17 {dimension_numbers = #tpu.dot_dimension_numbers<[1], [0], [0], [1], [0, 0, 1, 1], [], []>} : vector<16x4xbf16>, vector<4x8xbf16>, vector<16x8xf32> -> vector<16x8xf32>
    %29 = arith.addf %24, %28 : vector<16x8xf32>
    %30 = vector.extract_strided_slice %23 {offsets = [1, 0], sizes = [16, 4], strides = [1, 1]} : vector<22x4xbf16> to vector<16x4xbf16>
    %c1 = arith.constant 1 : index
    %c0_18 = arith.constant 0 : index
    %c0_19 = arith.constant 0 : index
    %31 = vector.load %arg4[%c1, %c0_18, %c0_19] : memref<7x4x8xbf16, #tpu.memory_space<vmem>>, vector<1x4x8xbf16>
    %32 = vector.shape_cast %31 : vector<1x4x8xbf16> to vector<4x8xbf16>
    %cst_20 = arith.constant dense<0.000000e+00> : vector<16x8xf32>
    %33 = tpu.matmul %30, %32, %cst_20 {dimension_numbers = #tpu.dot_dimension_numbers<[1], [0], [0], [1], [0, 0, 1, 1], [], []>} : vector<16x4xbf16>, vector<4x8xbf16>, vector<16x8xf32> -> vector<16x8xf32>
    %34 = arith.addf %29, %33 : vector<16x8xf32>
    %35 = vector.extract_strided_slice %23 {offsets = [2, 0], sizes = [16, 4], strides = [1, 1]} : vector<22x4xbf16> to vector<16x4xbf16>
    %c2 = arith.constant 2 : index
    %c0_21 = arith.constant 0 : index
    %c0_22 = arith.constant 0 : index
    %36 = vector.load %arg4[%c2, %c0_21, %c0_22] : memref<7x4x8xbf16, #tpu.memory_space<vmem>>, vector<1x4x8xbf16>
    %37 = vector.shape_cast %36 : vector<1x4x8xbf16> to vector<4x8xbf16>
    %cst_23 = arith.constant dense<0.000000e+00> : vector<16x8xf32>
    %38 = tpu.matmul %35, %37, %cst_23 {dimension_numbers = #tpu.dot_dimension_numbers<[1], [0], [0], [1], [0, 0, 1, 1], [], []>} : vector<16x4xbf16>, vector<4x8xbf16>, vector<16x8xf32> -> vector<16x8xf32>
    %39 = arith.addf %34, %38 : vector<16x8xf32>
    %40 = vector.extract_strided_slice %23 {offsets = [3, 0], sizes = [16, 4], strides = [1, 1]} : vector<22x4xbf16> to vector<16x4xbf16>
    %c3 = arith.constant 3 : index
    %c0_24 = arith.constant 0 : index
    %c0_25 = arith.constant 0 : index
    %41 = vector.load %arg4[%c3, %c0_24, %c0_25] : memref<7x4x8xbf16, #tpu.memory_space<vmem>>, vector<1x4x8xbf16>
    %42 = vector.shape_cast %41 : vector<1x4x8xbf16> to vector<4x8xbf16>
    %cst_26 = arith.constant dense<0.000000e+00> : vector<16x8xf32>
    %43 = tpu.matmul %40, %42, %cst_26 {dimension_numbers = #tpu.dot_dimension_numbers<[1], [0], [0], [1], [0, 0, 1, 1], [], []>} : vector<16x4xbf16>, vector<4x8xbf16>, vector<16x8xf32> -> vector<16x8xf32>
    %44 = arith.addf %39, %43 : vector<16x8xf32>
    %45 = vector.extract_strided_slice %23 {offsets = [4, 0], sizes = [16, 4], strides = [1, 1]} : vector<22x4xbf16> to vector<16x4xbf16>
    %c4 = arith.constant 4 : index
    %c0_27 = arith.constant 0 : index
    %c0_28 = arith.constant 0 : index
    %46 = vector.load %arg4[%c4, %c0_27, %c0_28] : memref<7x4x8xbf16, #tpu.memory_space<vmem>>, vector<1x4x8xbf16>
    %47 = vector.shape_cast %46 : vector<1x4x8xbf16> to vector<4x8xbf16>
    %cst_29 = arith.constant dense<0.000000e+00> : vector<16x8xf32>
    %48 = tpu.matmul %45, %47, %cst_29 {dimension_numbers = #tpu.dot_dimension_numbers<[1], [0], [0], [1], [0, 0, 1, 1], [], []>} : vector<16x4xbf16>, vector<4x8xbf16>, vector<16x8xf32> -> vector<16x8xf32>
    %49 = arith.addf %44, %48 : vector<16x8xf32>
    %50 = vector.extract_strided_slice %23 {offsets = [5, 0], sizes = [16, 4], strides = [1, 1]} : vector<22x4xbf16> to vector<16x4xbf16>
    %c5 = arith.constant 5 : index
    %c0_30 = arith.constant 0 : index
    %c0_31 = arith.constant 0 : index
    %51 = vector.load %arg4[%c5, %c0_30, %c0_31] : memref<7x4x8xbf16, #tpu.memory_space<vmem>>, vector<1x4x8xbf16>
    %52 = vector.shape_cast %51 : vector<1x4x8xbf16> to vector<4x8xbf16>
    %cst_32 = arith.constant dense<0.000000e+00> : vector<16x8xf32>
    %53 = tpu.matmul %50, %52, %cst_32 {dimension_numbers = #tpu.dot_dimension_numbers<[1], [0], [0], [1], [0, 0, 1, 1], [], []>} : vector<16x4xbf16>, vector<4x8xbf16>, vector<16x8xf32> -> vector<16x8xf32>
    %54 = arith.addf %49, %53 : vector<16x8xf32>
    %55 = vector.extract_strided_slice %23 {offsets = [6, 0], sizes = [16, 4], strides = [1, 1]} : vector<22x4xbf16> to vector<16x4xbf16>
    %c6 = arith.constant 6 : index
    %c0_33 = arith.constant 0 : index
    %c0_34 = arith.constant 0 : index
    %56 = vector.load %arg4[%c6, %c0_33, %c0_34] : memref<7x4x8xbf16, #tpu.memory_space<vmem>>, vector<1x4x8xbf16>
    %57 = vector.shape_cast %56 : vector<1x4x8xbf16> to vector<4x8xbf16>
    %cst_35 = arith.constant dense<0.000000e+00> : vector<16x8xf32>
    %58 = tpu.matmul %55, %57, %cst_35 {dimension_numbers = #tpu.dot_dimension_numbers<[1], [0], [0], [1], [0, 0, 1, 1], [], []>} : vector<16x4xbf16>, vector<4x8xbf16>, vector<16x8xf32> -> vector<16x8xf32>
    %59 = arith.addf %54, %58 : vector<16x8xf32>
    %c0_36 = arith.constant 0 : index
    %c0_37 = arith.constant 0 : index
    %60 = vector.load %arg5[%c0_36, %c0_37] : memref<1x8xf32, #tpu.memory_space<vmem>>, vector<1x8xf32>
    %61 = vector.shape_cast %60 : vector<1x8xf32> to vector<8xf32>
    %62 = vector.shape_cast %61 : vector<8xf32> to vector<1x8xf32>
    %63 = vector.broadcast %62 : vector<1x8xf32> to vector<16x8xf32>
    %64 = arith.addf %59, %63 : vector<16x8xf32>
    %cst_38 = arith.constant 0.000000e+00 : f32
    %cst_39 = arith.constant 6.000000e+00 : f32
    %65 = vector.broadcast %cst_38 : f32 to vector<16x8xf32>
    %66 = arith.maximumf %65, %64 : vector<16x8xf32>
    %67 = vector.broadcast %cst_39 : f32 to vector<16x8xf32>
    %68 = arith.minimumf %67, %66 : vector<16x8xf32>
    %c0_40 = arith.constant 0 : index
    %c0_41 = arith.constant 0 : index
    %c0_42 = arith.constant 0 : index
    %69 = vector.load %arg13[%c0_40, %c0_41, %c0_42] : memref<1x16x8xf32, #tpu.memory_space<vmem>>, vector<1x16x8xf32>
    %70 = vector.shape_cast %69 : vector<1x16x8xf32> to vector<16x8xf32>
    %71 = vector.shape_cast %68 : vector<16x8xf32> to vector<1x16x8xf32>
    tpu.vector_store %arg13[%c0_40, %c0_41, %c0_42], %71 {strides = array<i32>} : memref<1x16x8xf32, #tpu.memory_space<vmem>>, vector<1x16x8xf32>,
    %cst_43 = arith.constant 0.000000e+00 : bf16
    %72 = vector.broadcast %cst_43 : bf16 to vector<3x4xbf16>
    %73 = tpu.concatenate %72, %21, %72 in 0 : vector<3x4xbf16>, vector<16x4xbf16>, vector<3x4xbf16> -> vector<22x4xbf16>
    %cst_44 = arith.constant 0.000000e+00 : f32
    %74 = vector.broadcast %cst_44 : f32 to vector<16x4xf32>
    %75 = vector.extract_strided_slice %73 {offsets = [0, 0], sizes = [16, 4], strides = [1, 1]} : vector<22x4xbf16> to vector<16x4xbf16>
    %c0_45 = arith.constant 0 : index
    %c0_46 = arith.constant 0 : index
    %c0_47 = arith.constant 0 : index
    %76 = vector.load %arg6[%c0_45, %c0_46, %c0_47] : memref<7x4x4xbf16, #tpu.memory_space<vmem>>, vector<1x4x4xbf16>
    %77 = vector.shape_cast %76 : vector<1x4x4xbf16> to vector<4x4xbf16>
    %cst_48 = arith.constant dense<0.000000e+00> : vector<16x4xf32>
    %78 = tpu.matmul %75, %77, %cst_48 {dimension_numbers = #tpu.dot_dimension_numbers<[1], [0], [0], [1], [0, 0, 1, 1], [], []>} : vector<16x4xbf16>, vector<4x4xbf16>, vector<16x4xf32> -> vector<16x4xf32>
    %79 = arith.addf %74, %78 : vector<16x4xf32>
    %80 = vector.extract_strided_slice %73 {offsets = [1, 0], sizes = [16, 4], strides = [1, 1]} : vector<22x4xbf16> to vector<16x4xbf16>
    %c1_49 = arith.constant 1 : index
    %c0_50 = arith.constant 0 : index
    %c0_51 = arith.constant 0 : index
    %81 = vector.load %arg6[%c1_49, %c0_50, %c0_51] : memref<7x4x4xbf16, #tpu.memory_space<vmem>>, vector<1x4x4xbf16>
    %82 = vector.shape_cast %81 : vector<1x4x4xbf16> to vector<4x4xbf16>
    %cst_52 = arith.constant dense<0.000000e+00> : vector<16x4xf32>
    %83 = tpu.matmul %80, %82, %cst_52 {dimension_numbers = #tpu.dot_dimension_numbers<[1], [0], [0], [1], [0, 0, 1, 1], [], []>} : vector<16x4xbf16>, vector<4x4xbf16>, vector<16x4xf32> -> vector<16x4xf32>
    %84 = arith.addf %79, %83 : vector<16x4xf32>
    %85 = vector.extract_strided_slice %73 {offsets = [2, 0], sizes = [16, 4], strides = [1, 1]} : vector<22x4xbf16> to vector<16x4xbf16>
    %c2_53 = arith.constant 2 : index
    %c0_54 = arith.constant 0 : index
    %c0_55 = arith.constant 0 : index
    %86 = vector.load %arg6[%c2_53, %c0_54, %c0_55] : memref<7x4x4xbf16, #tpu.memory_space<vmem>>, vector<1x4x4xbf16>
    %87 = vector.shape_cast %86 : vector<1x4x4xbf16> to vector<4x4xbf16>
    %cst_56 = arith.constant dense<0.000000e+00> : vector<16x4xf32>
    %88 = tpu.matmul %85, %87, %cst_56 {dimension_numbers = #tpu.dot_dimension_numbers<[1], [0], [0], [1], [0, 0, 1, 1], [], []>} : vector<16x4xbf16>, vector<4x4xbf16>, vector<16x4xf32> -> vector<16x4xf32>
    %89 = arith.addf %84, %88 : vector<16x4xf32>
    %90 = vector.extract_strided_slice %73 {offsets = [3, 0], sizes = [16, 4], strides = [1, 1]} : vector<22x4xbf16> to vector<16x4xbf16>
    %c3_57 = arith.constant 3 : index
    %c0_58 = arith.constant 0 : index
    %c0_59 = arith.constant 0 : index
    %91 = vector.load %arg6[%c3_57, %c0_58, %c0_59] : memref<7x4x4xbf16, #tpu.memory_space<vmem>>, vector<1x4x4xbf16>
    %92 = vector.shape_cast %91 : vector<1x4x4xbf16> to vector<4x4xbf16>
    %cst_60 = arith.constant dense<0.000000e+00> : vector<16x4xf32>
    %93 = tpu.matmul %90, %92, %cst_60 {dimension_numbers = #tpu.dot_dimension_numbers<[1], [0], [0], [1], [0, 0, 1, 1], [], []>} : vector<16x4xbf16>, vector<4x4xbf16>, vector<16x4xf32> -> vector<16x4xf32>
    %94 = arith.addf %89, %93 : vector<16x4xf32>
    %95 = vector.extract_strided_slice %73 {offsets = [4, 0], sizes = [16, 4], strides = [1, 1]} : vector<22x4xbf16> to vector<16x4xbf16>
    %c4_61 = arith.constant 4 : index
    %c0_62 = arith.constant 0 : index
    %c0_63 = arith.constant 0 : index
    %96 = vector.load %arg6[%c4_61, %c0_62, %c0_63] : memref<7x4x4xbf16, #tpu.memory_space<vmem>>, vector<1x4x4xbf16>
    %97 = vector.shape_cast %96 : vector<1x4x4xbf16> to vector<4x4xbf16>
    %cst_64 = arith.constant dense<0.000000e+00> : vector<16x4xf32>
    %98 = tpu.matmul %95, %97, %cst_64 {dimension_numbers = #tpu.dot_dimension_numbers<[1], [0], [0], [1], [0, 0, 1, 1], [], []>} : vector<16x4xbf16>, vector<4x4xbf16>, vector<16x4xf32> -> vector<16x4xf32>
    %99 = arith.addf %94, %98 : vector<16x4xf32>
    %100 = vector.extract_strided_slice %73 {offsets = [5, 0], sizes = [16, 4], strides = [1, 1]} : vector<22x4xbf16> to vector<16x4xbf16>
    %c5_65 = arith.constant 5 : index
    %c0_66 = arith.constant 0 : index
    %c0_67 = arith.constant 0 : index
    %101 = vector.load %arg6[%c5_65, %c0_66, %c0_67] : memref<7x4x4xbf16, #tpu.memory_space<vmem>>, vector<1x4x4xbf16>
    %102 = vector.shape_cast %101 : vector<1x4x4xbf16> to vector<4x4xbf16>
    %cst_68 = arith.constant dense<0.000000e+00> : vector<16x4xf32>
    %103 = tpu.matmul %100, %102, %cst_68 {dimension_numbers = #tpu.dot_dimension_numbers<[1], [0], [0], [1], [0, 0, 1, 1], [], []>} : vector<16x4xbf16>, vector<4x4xbf16>, vector<16x4xf32> -> vector<16x4xf32>
    %104 = arith.addf %99, %103 : vector<16x4xf32>
    %105 = vector.extract_strided_slice %73 {offsets = [6, 0], sizes = [16, 4], strides = [1, 1]} : vector<22x4xbf16> to vector<16x4xbf16>
    %c6_69 = arith.constant 6 : index
    %c0_70 = arith.constant 0 : index
    %c0_71 = arith.constant 0 : index
    %106 = vector.load %arg6[%c6_69, %c0_70, %c0_71] : memref<7x4x4xbf16, #tpu.memory_space<vmem>>, vector<1x4x4xbf16>
    %107 = vector.shape_cast %106 : vector<1x4x4xbf16> to vector<4x4xbf16>
    %cst_72 = arith.constant dense<0.000000e+00> : vector<16x4xf32>
    %108 = tpu.matmul %105, %107, %cst_72 {dimension_numbers = #tpu.dot_dimension_numbers<[1], [0], [0], [1], [0, 0, 1, 1], [], []>} : vector<16x4xbf16>, vector<4x4xbf16>, vector<16x4xf32> -> vector<16x4xf32>
    %109 = arith.addf %104, %108 : vector<16x4xf32>
    %c0_73 = arith.constant 0 : index
    %c0_74 = arith.constant 0 : index
    %110 = vector.load %arg7[%c0_73, %c0_74] : memref<1x4xf32, #tpu.memory_space<vmem>>, vector<1x4xf32>
    %111 = vector.shape_cast %110 : vector<1x4xf32> to vector<4xf32>
    %112 = vector.shape_cast %111 : vector<4xf32> to vector<1x4xf32>
    %113 = vector.broadcast %112 : vector<1x4xf32> to vector<16x4xf32>
    %114 = arith.addf %109, %113 : vector<16x4xf32>
    %cst_75 = arith.constant 0.000000e+00 : f32
    %cst_76 = arith.constant 6.000000e+00 : f32
    %115 = vector.broadcast %cst_75 : f32 to vector<16x4xf32>
    %116 = arith.maximumf %115, %114 : vector<16x4xf32>
    %117 = vector.broadcast %cst_76 : f32 to vector<16x4xf32>
    %118 = arith.minimumf %117, %116 : vector<16x4xf32>
    %119 = arith.truncf %118 : vector<16x4xf32> to vector<16x4xbf16>
    %cst_77 = arith.constant 0.000000e+00 : bf16
    %120 = vector.broadcast %cst_77 : bf16 to vector<3x4xbf16>
    %121 = tpu.concatenate %120, %119, %120 in 0 : vector<3x4xbf16>, vector<16x4xbf16>, vector<3x4xbf16> -> vector<22x4xbf16>
    %cst_78 = arith.constant 0.000000e+00 : f32
    %122 = vector.broadcast %cst_78 : f32 to vector<16x8xf32>
    %123 = vector.extract_strided_slice %121 {offsets = [0, 0], sizes = [16, 4], strides = [1, 1]} : vector<22x4xbf16> to vector<16x4xbf16>
    %c0_79 = arith.constant 0 : index
    %c0_80 = arith.constant 0 : index
    %c0_81 = arith.constant 0 : index
    %124 = vector.load %arg8[%c0_79, %c0_80, %c0_81] : memref<7x4x8xbf16, #tpu.memory_space<vmem>>, vector<1x4x8xbf16>
    %125 = vector.shape_cast %124 : vector<1x4x8xbf16> to vector<4x8xbf16>
    %cst_82 = arith.constant dense<0.000000e+00> : vector<16x8xf32>
    %126 = tpu.matmul %123, %125, %cst_82 {dimension_numbers = #tpu.dot_dimension_numbers<[1], [0], [0], [1], [0, 0, 1, 1], [], []>} : vector<16x4xbf16>, vector<4x8xbf16>, vector<16x8xf32> -> vector<16x8xf32>
    %127 = arith.addf %122, %126 : vector<16x8xf32>
    %128 = vector.extract_strided_slice %121 {offsets = [1, 0], sizes = [16, 4], strides = [1, 1]} : vector<22x4xbf16> to vector<16x4xbf16>
    %c1_83 = arith.constant 1 : index
    %c0_84 = arith.constant 0 : index
    %c0_85 = arith.constant 0 : index
    %129 = vector.load %arg8[%c1_83, %c0_84, %c0_85] : memref<7x4x8xbf16, #tpu.memory_space<vmem>>, vector<1x4x8xbf16>
    %130 = vector.shape_cast %129 : vector<1x4x8xbf16> to vector<4x8xbf16>
    %cst_86 = arith.constant dense<0.000000e+00> : vector<16x8xf32>
    %131 = tpu.matmul %128, %130, %cst_86 {dimension_numbers = #tpu.dot_dimension_numbers<[1], [0], [0], [1], [0, 0, 1, 1], [], []>} : vector<16x4xbf16>, vector<4x8xbf16>, vector<16x8xf32> -> vector<16x8xf32>
    %132 = arith.addf %127, %131 : vector<16x8xf32>
    %133 = vector.extract_strided_slice %121 {offsets = [2, 0], sizes = [16, 4], strides = [1, 1]} : vector<22x4xbf16> to vector<16x4xbf16>
    %c2_87 = arith.constant 2 : index
    %c0_88 = arith.constant 0 : index
    %c0_89 = arith.constant 0 : index
    %134 = vector.load %arg8[%c2_87, %c0_88, %c0_89] : memref<7x4x8xbf16, #tpu.memory_space<vmem>>, vector<1x4x8xbf16>
    %135 = vector.shape_cast %134 : vector<1x4x8xbf16> to vector<4x8xbf16>
    %cst_90 = arith.constant dense<0.000000e+00> : vector<16x8xf32>
    %136 = tpu.matmul %133, %135, %cst_90 {dimension_numbers = #tpu.dot_dimension_numbers<[1], [0], [0], [1], [0, 0, 1, 1], [], []>} : vector<16x4xbf16>, vector<4x8xbf16>, vector<16x8xf32> -> vector<16x8xf32>
    %137 = arith.addf %132, %136 : vector<16x8xf32>
    %138 = vector.extract_strided_slice %121 {offsets = [3, 0], sizes = [16, 4], strides = [1, 1]} : vector<22x4xbf16> to vector<16x4xbf16>
    %c3_91 = arith.constant 3 : index
    %c0_92 = arith.constant 0 : index
    %c0_93 = arith.constant 0 : index
    %139 = vector.load %arg8[%c3_91, %c0_92, %c0_93] : memref<7x4x8xbf16, #tpu.memory_space<vmem>>, vector<1x4x8xbf16>
    %140 = vector.shape_cast %139 : vector<1x4x8xbf16> to vector<4x8xbf16>
    %cst_94 = arith.constant dense<0.000000e+00> : vector<16x8xf32>
    %141 = tpu.matmul %138, %140, %cst_94 {dimension_numbers = #tpu.dot_dimension_numbers<[1], [0], [0], [1], [0, 0, 1, 1], [], []>} : vector<16x4xbf16>, vector<4x8xbf16>, vector<16x8xf32> -> vector<16x8xf32>
    %142 = arith.addf %137, %141 : vector<16x8xf32>
    %143 = vector.extract_strided_slice %121 {offsets = [4, 0], sizes = [16, 4], strides = [1, 1]} : vector<22x4xbf16> to vector<16x4xbf16>
    %c4_95 = arith.constant 4 : index
    %c0_96 = arith.constant 0 : index
    %c0_97 = arith.constant 0 : index
    %144 = vector.load %arg8[%c4_95, %c0_96, %c0_97] : memref<7x4x8xbf16, #tpu.memory_space<vmem>>, vector<1x4x8xbf16>
    %145 = vector.shape_cast %144 : vector<1x4x8xbf16> to vector<4x8xbf16>
    %cst_98 = arith.constant dense<0.000000e+00> : vector<16x8xf32>
    %146 = tpu.matmul %143, %145, %cst_98 {dimension_numbers = #tpu.dot_dimension_numbers<[1], [0], [0], [1], [0, 0, 1, 1], [], []>} : vector<16x4xbf16>, vector<4x8xbf16>, vector<16x8xf32> -> vector<16x8xf32>
    %147 = arith.addf %142, %146 : vector<16x8xf32>
    %148 = vector.extract_strided_slice %121 {offsets = [5, 0], sizes = [16, 4], strides = [1, 1]} : vector<22x4xbf16> to vector<16x4xbf16>
    %c5_99 = arith.constant 5 : index
    %c0_100 = arith.constant 0 : index
    %c0_101 = arith.constant 0 : index
    %149 = vector.load %arg8[%c5_99, %c0_100, %c0_101] : memref<7x4x8xbf16, #tpu.memory_space<vmem>>, vector<1x4x8xbf16>
    %150 = vector.shape_cast %149 : vector<1x4x8xbf16> to vector<4x8xbf16>
    %cst_102 = arith.constant dense<0.000000e+00> : vector<16x8xf32>
    %151 = tpu.matmul %148, %150, %cst_102 {dimension_numbers = #tpu.dot_dimension_numbers<[1], [0], [0], [1], [0, 0, 1, 1], [], []>} : vector<16x4xbf16>, vector<4x8xbf16>, vector<16x8xf32> -> vector<16x8xf32>
    %152 = arith.addf %147, %151 : vector<16x8xf32>
    %153 = vector.extract_strided_slice %121 {offsets = [6, 0], sizes = [16, 4], strides = [1, 1]} : vector<22x4xbf16> to vector<16x4xbf16>
    %c6_103 = arith.constant 6 : index
    %c0_104 = arith.constant 0 : index
    %c0_105 = arith.constant 0 : index
    %154 = vector.load %arg8[%c6_103, %c0_104, %c0_105] : memref<7x4x8xbf16, #tpu.memory_space<vmem>>, vector<1x4x8xbf16>
    %155 = vector.shape_cast %154 : vector<1x4x8xbf16> to vector<4x8xbf16>
    %cst_106 = arith.constant dense<0.000000e+00> : vector<16x8xf32>
    %156 = tpu.matmul %153, %155, %cst_106 {dimension_numbers = #tpu.dot_dimension_numbers<[1], [0], [0], [1], [0, 0, 1, 1], [], []>} : vector<16x4xbf16>, vector<4x8xbf16>, vector<16x8xf32> -> vector<16x8xf32>
    %157 = arith.addf %152, %156 : vector<16x8xf32>
    %c0_107 = arith.constant 0 : index
    %c0_108 = arith.constant 0 : index
    %158 = vector.load %arg9[%c0_107, %c0_108] : memref<1x8xf32, #tpu.memory_space<vmem>>, vector<1x8xf32>
    %159 = vector.shape_cast %158 : vector<1x8xf32> to vector<8xf32>
    %160 = vector.shape_cast %159 : vector<8xf32> to vector<1x8xf32>
    %161 = vector.broadcast %160 : vector<1x8xf32> to vector<16x8xf32>
    %162 = arith.addf %157, %161 : vector<16x8xf32>
    %cst_109 = arith.constant 0.000000e+00 : f32
    %cst_110 = arith.constant 6.000000e+00 : f32
    %163 = vector.broadcast %cst_109 : f32 to vector<16x8xf32>
    %164 = arith.maximumf %163, %162 : vector<16x8xf32>
    %165 = vector.broadcast %cst_110 : f32 to vector<16x8xf32>
    %166 = arith.minimumf %165, %164 : vector<16x8xf32>
    %c0_111 = arith.constant 0 : index
    %c0_112 = arith.constant 0 : index
    %c0_113 = arith.constant 0 : index
    %167 = vector.load %arg14[%c0_111, %c0_112, %c0_113] : memref<1x16x8xf32, #tpu.memory_space<vmem>>, vector<1x16x8xf32>
    %168 = vector.shape_cast %167 : vector<1x16x8xf32> to vector<16x8xf32>
    %169 = vector.shape_cast %166 : vector<16x8xf32> to vector<1x16x8xf32>
    tpu.vector_store %arg14[%c0_111, %c0_112, %c0_113], %169 {strides = array<i32>} : memref<1x16x8xf32, #tpu.memory_space<vmem>>, vector<1x16x8xf32>,
    %cst_114 = arith.constant 0xFF80 : bf16
    %170 = vector.broadcast %cst_114 : bf16 to vector<1x8xbf16>
    %171 = tpu.concatenate %170, %1, %170 in 0 : vector<1x8xbf16>, vector<16x8xbf16>, vector<1x8xbf16> -> vector<18x8xbf16>
    %172 = vector.extract_strided_slice %171 {offsets = [0, 0], sizes = [16, 8], strides = [1, 1]} : vector<18x8xbf16> to vector<16x8xbf16>
    %173 = vector.extract_strided_slice %171 {offsets = [1, 0], sizes = [16, 8], strides = [1, 1]} : vector<18x8xbf16> to vector<16x8xbf16>
    %174 = arith.maximumf %172, %173 : vector<16x8xbf16>
    %175 = vector.extract_strided_slice %171 {offsets = [2, 0], sizes = [16, 8], strides = [1, 1]} : vector<18x8xbf16> to vector<16x8xbf16>
    %176 = arith.maximumf %174, %175 : vector<16x8xbf16>
    %c0_115 = arith.constant 0 : index
    %c0_116 = arith.constant 0 : index
    %c0_117 = arith.constant 0 : index
    %177 = vector.load %arg10[%c0_115, %c0_116, %c0_117] : memref<1x8x8xbf16, #tpu.memory_space<vmem>>, vector<1x8x8xbf16>
    %178 = vector.shape_cast %177 : vector<1x8x8xbf16> to vector<8x8xbf16>
    %cst_118 = arith.constant dense<0.000000e+00> : vector<16x8xf32>
    %179 = tpu.matmul %176, %178, %cst_118 {dimension_numbers = #tpu.dot_dimension_numbers<[1], [0], [0], [1], [0, 0, 1, 1], [], []>} : vector<16x8xbf16>, vector<8x8xbf16>, vector<16x8xf32> -> vector<16x8xf32>
    %c0_119 = arith.constant 0 : index
    %c0_120 = arith.constant 0 : index
    %180 = vector.load %arg11[%c0_119, %c0_120] : memref<1x8xf32, #tpu.memory_space<vmem>>, vector<1x8xf32>
    %181 = vector.shape_cast %180 : vector<1x8xf32> to vector<8xf32>
    %182 = vector.shape_cast %181 : vector<8xf32> to vector<1x8xf32>
    %183 = vector.broadcast %182 : vector<1x8xf32> to vector<16x8xf32>
    %184 = arith.addf %179, %183 : vector<16x8xf32>
    %cst_121 = arith.constant 0.000000e+00 : f32
    %cst_122 = arith.constant 6.000000e+00 : f32
    %185 = vector.broadcast %cst_121 : f32 to vector<16x8xf32>
    %186 = arith.maximumf %185, %184 : vector<16x8xf32>
    %187 = vector.broadcast %cst_122 : f32 to vector<16x8xf32>
    %188 = arith.minimumf %187, %186 : vector<16x8xf32>
    %c0_123 = arith.constant 0 : index
    %c0_124 = arith.constant 0 : index
    %c0_125 = arith.constant 0 : index
    %189 = vector.load %arg15[%c0_123, %c0_124, %c0_125] : memref<1x16x8xf32, #tpu.memory_space<vmem>>, vector<1x16x8xf32>
    %190 = vector.shape_cast %189 : vector<1x16x8xf32> to vector<16x8xf32>
    %191 = vector.shape_cast %188 : vector<16x8xf32> to vector<1x16x8xf32>
    tpu.vector_store %arg15[%c0_123, %c0_124, %c0_125], %191 {strides = array<i32>} : memref<1x16x8xf32, #tpu.memory_space<vmem>>, vector<1x16x8xf32>,
    return
  }
  func.func @transform_0(%arg0: i32) -> (i32, i32, i32) {
    %c0_i32 = arith.constant 0 : i32
    %c0_i32_0 = arith.constant 0 : i32
    %c0_i32_1 = arith.constant 0 : i32
    return %arg0, %c0_i32, %c0_i32_0 : i32, i32, i32
  }
  func.func @transform_1(%arg0: i32) -> (i32, i32, i32) {
    %c0_i32 = arith.constant 0 : i32
    %c0_i32_0 = arith.constant 0 : i32
    %c0_i32_1 = arith.constant 0 : i32
    %c0_i32_2 = arith.constant 0 : i32
    return %c0_i32, %c0_i32_0, %c0_i32_1 : i32, i32, i32
  }
  func.func @transform_2(%arg0: i32) -> (i32, i32) {
    %c0_i32 = arith.constant 0 : i32
    %c0_i32_0 = arith.constant 0 : i32
    %c0_i32_1 = arith.constant 0 : i32
    return %c0_i32, %c0_i32_0 : i32, i32
  }
  func.func @transform_3(%arg0: i32) -> (i32, i32, i32) {
    %c0_i32 = arith.constant 0 : i32
    %c0_i32_0 = arith.constant 0 : i32
    %c0_i32_1 = arith.constant 0 : i32
    %c0_i32_2 = arith.constant 0 : i32
    return %c0_i32, %c0_i32_0, %c0_i32_1 : i32, i32, i32
  }
  func.func @transform_4(%arg0: i32) -> (i32, i32) {
    %c0_i32 = arith.constant 0 : i32
    %c0_i32_0 = arith.constant 0 : i32
    %c0_i32_1 = arith.constant 0 : i32
    return %c0_i32, %c0_i32_0 : i32, i32
  }
  func.func @transform_5(%arg0: i32) -> (i32, i32, i32) {
    %c0_i32 = arith.constant 0 : i32
    %c0_i32_0 = arith.constant 0 : i32
    %c0_i32_1 = arith.constant 0 : i32
    %c0_i32_2 = arith.constant 0 : i32
    return %c0_i32, %c0_i32_0, %c0_i32_1 : i32, i32, i32
  }
  func.func @transform_6(%arg0: i32) -> (i32, i32) {
    %c0_i32 = arith.constant 0 : i32
    %c0_i32_0 = arith.constant 0 : i32
    %c0_i32_1 = arith.constant 0 : i32
    return %c0_i32, %c0_i32_0 : i32, i32
  }
  func.func @transform_7(%arg0: i32) -> (i32, i32, i32) {
    %c0_i32 = arith.constant 0 : i32
    %c0_i32_0 = arith.constant 0 : i32
    %c0_i32_1 = arith.constant 0 : i32
    %c0_i32_2 = arith.constant 0 : i32
    return %c0_i32, %c0_i32_0, %c0_i32_1 : i32, i32, i32
  }
  func.func @transform_8(%arg0: i32) -> (i32, i32) {
    %c0_i32 = arith.constant 0 : i32
    %c0_i32_0 = arith.constant 0 : i32
    %c0_i32_1 = arith.constant 0 : i32
    return %c0_i32, %c0_i32_0 : i32, i32
  }
  func.func @transform_9(%arg0: i32) -> (i32, i32, i32) {
    %c0_i32 = arith.constant 0 : i32
    %c0_i32_0 = arith.constant 0 : i32
    %c0_i32_1 = arith.constant 0 : i32
    %c0_i32_2 = arith.constant 0 : i32
    return %c0_i32, %c0_i32_0, %c0_i32_1 : i32, i32, i32
  }
  func.func @transform_10(%arg0: i32) -> (i32, i32) {
    %c0_i32 = arith.constant 0 : i32
    %c0_i32_0 = arith.constant 0 : i32
    %c0_i32_1 = arith.constant 0 : i32
    return %c0_i32, %c0_i32_0 : i32, i32
  }
  func.func @transform_11(%arg0: i32) -> (i32, i32, i32) {
    %c0_i32 = arith.constant 0 : i32
    %c0_i32_0 = arith.constant 0 : i32
    %c0_i32_1 = arith.constant 0 : i32
    return %arg0, %c0_i32, %c0_i32_0 : i32, i32, i32
  }
  func.func @transform_12(%arg0: i32) -> (i32, i32, i32) {
    %c0_i32 = arith.constant 0 : i32
    %c0_i32_0 = arith.constant 0 : i32
    %c0_i32_1 = arith.constant 0 : i32
    return %arg0, %c0_i32, %c0_i32_0 : i32, i32, i32
  }
  func.func @transform_13(%arg0: i32) -> (i32, i32, i32) {
    %c0_i32 = arith.constant 0 : i32
    %c0_i32_0 = arith.constant 0 : i32
    %c0_i32_1 = arith.constant 0 : i32
    return %arg0, %c0_i32, %c0_i32_0 : i32, i32, i32
  }
  func.func @transform_14(%arg0: i32) -> (i32, i32, i32) {
    %c0_i32 = arith.constant 0 : i32
    %c0_i32_0 = arith.constant 0 : i32
    %c0_i32_1 = arith.constant 0 : i32
    return %arg0, %c0_i32, %c0_i32_0 : i32, i32, i32
  }
}

</mosaic_0001>

<bundles_post_ra>
// kernel: tpu_custom_call.1
= control target key start
LH: loop header
LB: loop body
LE: loop exit
PB: predicated region body
PF: predicated region fallthrough
CT: control target
= control target key end

     0   :  { %s1635_s29 = smov 0   ;;  %s1864_s0 = inlined_call_operand.vmem [shape: bf16[2,16,8], index: 0, kind: input, shape index: {}]   ;;  %s1865_s1 = inlined_call_operand.vmem [shape: bf16[1,8,16], index: 1, kind: input, shape index: {}]   ;;  %s1866_s2 = inlined_call_operand.vmem [shape: f32[1,16], index: 2, kind: input, shape index: {}]   ;;  %s1867_s3 = inlined_call_operand.vmem [shape: bf16[7,4,8], index: 3, kind: input, shape index: {}]   ;;  %s1868_s4 = inlined_call_operand.vmem [shape: f32[1,8], index: 4, kind: input, shape index: {}]   ;;  %s1869_s5 = inlined_call_operand.vmem [shape: bf16[7,4,4], index: 5, kind: input, shape index: {}]   ;;  %s1870_s6 = inlined_call_operand.vmem [shape: f32[1,4], index: 6, kind: input, shape index: {}]   ;;  %s1871_s7 = inlined_call_operand.vmem [shape: bf16[7,4,8], index: 7, kind: input, shape index: {}]   ;;  %s1872_s8 = inlined_call_operand.vmem [shape: f32[1,8], index: 8, kind: input, shape index: {}]   ;;  %s1873_s9 = inlined_call_operand.vmem [shape: bf16[1,8,8], index: 9, kind: input, shape index: {}]   ;;  %s1874_s10 = inlined_call_operand.vmem [shape: f32[1,8], index: 10, kind: input, shape index: {}]   ;;  %s1875_s11 = inlined_call_operand.vmem [shape: f32[2,16,8], index: 11, kind: output, shape index: {0}]   ;;  %s1876_s12 = inlined_call_operand.vmem [shape: f32[2,16,8], index: 12, kind: output, shape index: {1}]   ;;  %s1877_s13 = inlined_call_operand.vmem [shape: f32[2,16,8], index: 13, kind: output, shape index: {2}]   ;;  %s1878_s14 = inlined_call_operand.vmem [shape: f32[2,16,8], index: 14, kind: output, shape index: {3}]  }
   0x1 LB: > { %s1467_s30 = sadd.s32 4294967295, %s1556_s29   ;;  %p1471_p0 = scmp.ge.s32.totalorder %s1556_s29, 1  ;;  %s1556_s29 = sphi %s1635_s29, %s25_s29  }
   0x2   : > { %p419_p1 = scmp.lt.s32.totalorder %s1556_s29, 3 }
   0x4   : > { %p420_p2 = pnand %p1471_p0, %p419_p1 }
   0x5   : > { %p480_p3 = scmp.lt.s32.totalorder (!%p420_p2), %s1467_s30, 1  ;;  %s1559_s15 = smov (!%p420_p2), 116  }
   0x6   : > { %423 = sbr.rel (%p420_p2) target bundleno = 672 (0x2a0), region = 64 }
   0xb   : > { %v509_v0 = vld [vmem:[%s1865_s1] sm:$0xf]  ;;  %vm523_vm0 = vcmask 1043456   ;;  %s1882_s30 = smov (!%p480_p3, %s1467_s30), 1  ;;  %vm519_vm1 = vcmask 64512   ;;  %vm565_vm2 = vcmask 1041408  }
   0xc   : > { %v525_v1 = vsel %vm523_vm0, %v509_v0, 0  ;;  %s1529_s17 = sshll.u32 %s1882_s30, 3  ;;  %v1545_v3 = vld [vmem:[%s1866_s2] ss:$0 sm:$0xff]  ;;  %s1657_s23 = sshll.u32 %s1882_s30, 4  ;;  %vm586_vm5 = vcmask 31744  }
   0xd   : > { %534 = vmatpush.bf16.msra.mxu0 %v525_v1  ;;  %s484_s20 = scalar_lea.vmem %s1864_s0, %s1529_s17  ;;  %v570_v7 = vld [vmem:[%s1867_s3] sm:$0x3]  ;;  %s489_s28 = scalar_lea.vmem %s1875_s11, %s1657_s23  ;;  %v1490_v24 = vld [vmem:[%s1867_s3 + $0x4] sm:$0x3]  ;;  %v1487_v26 = vld [vmem:[%s1867_s3 + $0x2] sm:$0x3] }
   0xe   : > { %v1650_v2 = vld [vmem:[%s484_s20] sm:$0xff]  ;;  %v611_v8 = vsel %vm565_vm2, %v570_v7, 0  ;;  %s1558_s30 = smov 120   ;;  %v639_v25 = vsel %vm565_vm2, %v1490_v24, 0  ;;  %v1496_v28 = vld [vmem:[%s1867_s3 + $0xa] sm:$0x3]  ;;  %s494_s18 = scalar_lea.vmem %s1876_s12, %s1657_s23 }
   0xf   : > { %620 = vmatpush.bf16.msra.mxu2 %v611_v8  ;;  %648 = vmatpush.bf16.msra.mxu3 %v639_v25  ;;  %v1492_v27 = vld [vmem:[%s1867_s3 + $0x6] sm:$0x3]  ;;  %v592_v29 = vsel %vm565_vm2, %v1487_v26, 0  ;;  %v733_v31 = vsel %vm565_vm2, %v1496_v28, 0  ;;  %v1494_v32 = vld [vmem:[%s1867_s3 + $0x8] sm:$0x3] }
  0x10   : > { %1486 = vmatmul.msk.bf16.vlgmr.msra.gmra.mxu0 %vm519_vm1, %v1650_v2  ;;  %v673_v30 = vsel %vm565_vm2, %v1492_v27, 0  ;;  %601 = vmatpush.bf16.msra.mxu1 %v592_v29  ;;  %v1498_v33 = vld [vmem:[%s1867_s3 + $0xc] sm:$0x3]  ;;  %v701_v34 = vsel %vm565_vm2, %v1494_v32, 0  ;;  %v1500_v36 = vld [vmem:[%s1869_s5 + $0x2] sm:$0x3] }
  0x11   : > { %682 = vmatpush.bf16.msrb.mxu0 %v673_v30  ;;  %v761_v35 = vsel %vm565_vm2, %v1498_v33, 0  ;;  %v815_v37 = vsel %vm565_vm2, %v1500_v36, 0  ;;  %vm566_vm3 = vsmask.f32 1280  ;;  %v1503_v38 = vld [vmem:[%s1869_s5 + $0x4] sm:$0x3] }
  0x12   : > { %vm1701_vm4 = vmand %vm565_vm2, %vm566_vm3  ;;  %v861_v41 = vsel %vm565_vm2, %v1503_v38, 0  ;;  %vm631_vm6 = vcmask 1046528   ;;  %v1505_v44 = vld [vmem:[%s1869_s5 + $0x6] sm:$0x3]  ;;  %v796_v54 = vld [vmem:[%s1869_s5] sm:$0x3] }
  0x13   : > { %742 = vmatpush.bf16.msrb.mxu2 %v733_v31  ;;  %770 = vmatpush.bf16.msrb.mxu3 %v761_v35  ;;  %v894_v55 = vsel %vm565_vm2, %v1505_v44, 0  ;;  %vm573_vm7 = vsmask.f32 7424  ;;  %vm659_vm8 = vsmask.f32 6400  ;;  %v834_v63 = vsel %vm565_vm2, %v796_v54, 0 }
  0x14   : > { %710 = vmatpush.bf16.msrb.mxu1 %v701_v34  ;;  %vm721_vm9 = vsmask.f32 5376  ;;  %vm753_vm10 = vcmask 1044480   ;;  %v1509_v25 = vld [vmem:[%s1869_s5 + $0xa] sm:$0x3]  ;;  %vm693_vm11 = vcmask 1045504  }
  0x15   : > { %824 = vmatpush.bf16.msra.mxu0 %v815_v37  ;;  %v952_v29 = vsel %vm565_vm2, %v1509_v25, 0  ;;  %vm1246_vm12 = vcmask 1040384   ;;  %vm1247_vm13 = vsmask.f32 256 }
  0x16   : > { %vm1248_vm14 = vmand %vm1246_vm12, %vm1247_vm13 }
  0x8d   : > { %v536_v4 = vpop.f32.mrf.mxu0 }
  0x8e   : > { %v537_v5 = vadd.f32 %v1545_v3, %v536_v4 }
  0x90   : > { %v541_v6 = vmax.f32 %v537_v5, 0.0 }
  0x92   : > { %v543_v9 = vmin.f32 %v541_v6, 6.0 }
  0x94   : > { %545 = vst.msk [vmem:[%s489_s28] sm:$0xff] %vm519_vm1, %v543_v9  ;;  %v547_v13 = vpack.c.bf16 %v543_v9, %v543_v9  ;;  %v1507_v9 = vld [vmem:[%s1869_s5 + $0x8] sm:$0x3] }
  0x95   : > { %v538_v10 = vpop.f32.mrf.mxu0 }
  0x96   : > { %v539_v11 = vadd.f32 %v1545_v3, %v538_v10  ;;  %v551_v16 = vunpack.c.l.b16 %v547_v13  ;;  %v1511_v13 = vld [vmem:[%s1869_s5 + $0xc] sm:$0x3] }
  0x98   : > { %v542_v12 = vmax.f32 %v539_v11, 0.0 }
  0x9a   : > { %v544_v14 = vmin.f32 %v542_v12, 6.0 }
  0x9c   : > { %546 = vst.msk [vmem:[%s489_s28 + $0x8] sm:$0xff] %vm519_vm1, %v544_v14  ;;  %v548_v15 = vpack.c.bf16 %v544_v14, %v544_v14  ;;  %v921_v14 = vsel %vm565_vm2, %v1507_v9, 0 }
  0x9e   : > { %v552_v17 = vunpack.c.l.b16 %v548_v15 }
  0xa0   : > { %v553_v18 = vpack.c.b16 %v552_v17, %v551_v16  ;;  %v979_v16 = vsel %vm565_vm2, %v1511_v13, 0 }
  0xa2   : > { %v555_v19 = vshrl.u32 %v553_v18, 16  ;;  %v558_v20 = vshll.u32 %v553_v18, 16 }
  0xa4   : > { %v557_v21 = vrot.slane %v555_v19, 6  ;;  %v560_v22 = vrot.slane %v558_v20, 7 }
  0xa6   : > { %v561_v23 = vor.u32 %v560_v22, %v557_v21 }
  0xa8   : > { %562 = vrot.lane.b32.xlu0 %v561_v23, %s1558_s30 }
  0xb0   : > { %791 = vrot.lane.b32.xlu0 %v561_v23, %s1559_s15  ;;  %s504_s15 = scalar_lea.vmem %s1878_s14, %s1657_s23 }
 0x11a   : > { %v563_v40 = vpop.permute.xlu0 %562 }
 0x11b   : > { %v1708_v42 = vsel %vm1701_vm4, 0, %v563_v40  ;;  %v1712_v43 = vsel %vm1701_vm4, %v563_v40, 0 }
 0x11c   : > { %v577_v45 = vshll.u32 %v1708_v42, 16  ;;  %v582_v46 = vshll.u32 %v1712_v43, 16  ;;  %v663_v47 = vshrl.u32 %v1712_v43, 16  ;;  %1489 = vmatmul.msk.bf16.vlgmr.msra.gmra.mxu2 %vm586_vm5, %v1708_v42  ;;  %v632_v48 = vrot.slane %v1708_v42, 1 }
 0x11d   : > { %v633_v49 = vrot.slane %v1712_v43, 1  ;;  %v575_v50 = vshrl.u32 %v1708_v42, 16  ;;  %870 = vmatpush.bf16.msra.mxu2 %v861_v41  ;;  %v754_v18 = vrot.slane %v1708_v42, 3  ;;  %v755_v19 = vrot.slane %v1712_v43, 3 }
 0x11e   : > { %v579_v51 = vrot.slane %v577_v45, 1  ;;  %v661_v52 = vrot.slane %v577_v45, 2  ;;  %v665_v53 = vrot.slane %v663_v47, 1  ;;  %v666_v58 = vrot.slane %v582_v46, 2 }
 0x11f   : > { %v634_v56 = vsel %vm631_vm6, %v632_v48, %v633_v49  ;;  %v660_v57 = vrot.slane %v575_v50, 1  ;;  %v584_v60 = vrot.slane %v582_v46, 1  ;;  %v722_v3 = vrot.slane %v575_v50, 2 }
 0x120   : > { %1491 = vmatmul.msk.bf16.vlgmr.msra.gmra.mxu3 %vm586_vm5, %v634_v56  ;;  %v580_v59 = vor.u32 %v579_v51, %v575_v50  ;;  %v667_v62 = vor.u32 %v666_v58, %v665_v53  ;;  %v723_v5 = vrot.slane %v577_v45, 3  ;;  %v725_v6 = vrot.slane %v663_v47, 2 }
 0x121   : > { %v662_v61 = vor.u32 %v661_v52, %v660_v57  ;;  %903 = vmatpush.bf16.msra.mxu3 %v894_v55  ;;  %v726_v7 = vrot.slane %v582_v46, 3  ;;  %v694_v23 = vrot.slane %v1708_v42, 2  ;;  %v695_v24 = vrot.slane %v1712_v43, 2 }
 0x122   : > { %v792_v0 = vpop.permute.xlu0 %791  ;;  %v585_v1 = vsel %vm573_vm7, %v580_v59, %v584_v60  ;;  %v724_v11 = vor.u32 %v723_v5, %v722_v3  ;;  %v756_v26 = vsel %vm753_vm10, %v754_v18, %v755_v19 }
 0x123   : > { %1488 = vmatmul.msk.bf16.vlgmr.msra.gmra.mxu1 %vm586_vm5, %v585_v1  ;;  %v668_v4 = vsel %vm659_vm8, %v662_v61, %v667_v62  ;;  %v794_v8 = vsel %vm1701_vm4, 0, %v792_v0  ;;  %v727_v12 = vor.u32 %v726_v7, %v725_v6  ;;  %v795_v15 = vsel %vm1701_vm4, %v792_v0, 0 }
 0x124   : > { %1493 = vmatmul.msk.bf16.vlgmr.msrb.gmra.mxu0 %vm586_vm5, %v668_v4  ;;  %843 = vmatpush.bf16.msra.mxu1 %v834_v63  ;;  %v802_v10 = vshll.u32 %v794_v8, 16  ;;  %v800_v21 = vshrl.u32 %v794_v8, 16  ;;  %v807_v22 = vshll.u32 %v795_v15, 16  ;;  %v696_v30 = vsel %vm693_vm11, %v694_v23, %v695_v24 }
 0x125   : > { %930 = vmatpush.bf16.msrb.mxu0 %v921_v14  ;;  %v728_v17 = vsel %vm721_vm9, %v724_v11, %v727_v12  ;;  %v884_v31 = vshrl.u32 %v795_v15, 16  ;;  %v854_v33 = vrot.slane %v794_v8, 1  ;;  %v855_v34 = vrot.slane %v795_v15, 1  ;;  %v1546_v12 = vld [vmem:[%s1868_s4] ss:$0 sm:$0xff] }
 0x126   : > { %v804_v20 = vrot.slane %v802_v10, 1  ;;  %v809_v28 = vrot.slane %v807_v22, 1  ;;  %v887_v36 = vrot.slane %v807_v22, 2  ;;  %v881_v37 = vrot.slane %v800_v21, 1 }
 0x127   : > { %v886_v35 = vrot.slane %v884_v31, 1  ;;  %v882_v38 = vrot.slane %v802_v10, 2  ;;  %v856_v40 = vsel %vm631_vm6, %v854_v33, %v855_v34  ;;  %v914_v43 = vrot.slane %v794_v8, 2 }
 0x128   : > { %v805_v27 = vor.u32 %v804_v20, %v800_v21  ;;  %v915_v44 = vrot.slane %v795_v15, 2  ;;  %v972_v47 = vrot.slane %v794_v8, 3  ;;  %v973_v48 = vrot.slane %v795_v15, 3 }
 0x129   : > { %v883_v41 = vor.u32 %v882_v38, %v881_v37  ;;  %v888_v42 = vor.u32 %v887_v36, %v886_v35  ;;  %v944_v49 = vrot.slane %v884_v31, 2  ;;  %v945_v50 = vrot.slane %v807_v22, 3  ;;  %v1282_v36 = vld [vmem:[%s1873_s9] sm:$0xf] }
 0x12a   : > { %v810_v32 = vsel %vm573_vm7, %v805_v27, %v809_v28  ;;  %v916_v46 = vsel %vm693_vm11, %v914_v43, %v915_v44  ;;  %v941_v51 = vrot.slane %v800_v21, 2  ;;  %v942_v52 = vrot.slane %v802_v10, 3 }
 0x12b   : > { %v889_v45 = vsel %vm659_vm8, %v883_v41, %v888_v42  ;;  %v974_v53 = vsel %vm753_vm10, %v972_v47, %v973_v48  ;;  %v946_v55 = vor.u32 %v945_v50, %v944_v49  ;;  %v1025_v41 = vld [vmem:[%s1871_s7] sm:$0x3]  ;;  %v1518_v42 = vld [vmem:[%s1871_s7 + $0x6] sm:$0x3]  ;;  %v1291_v43 = vsel %vm523_vm0, %v1282_v36, 0 }
 0x12c   : > { %1497 = vmatmul.msk.bf16.vlgmr.msrb.gmra.mxu2 %vm586_vm5, %v728_v17  ;;  %v943_v54 = vor.u32 %v942_v52, %v941_v51  ;;  %v1123_v47 = vsel %vm565_vm2, %v1518_v42, 0  ;;  %v1516_v52 = vld [vmem:[%s1871_s7 + $0x4] sm:$0x3] }
 0x12d   : > { %988 = vmatpush.bf16.msrb.mxu2 %v979_v16 }
 0x12e   : > { %v947_v56 = vsel %vm721_vm9, %v943_v54, %v946_v55  ;;  %v1547_v54 = vld [vmem:[%s1870_s6] ss:$0 sm:$0xff]  ;;  %v1090_v55 = vsel %vm565_vm2, %v1516_v52, 0 }
 0x130   : > { %1499 = vmatmul.msk.bf16.vlgmr.msrb.gmra.mxu3 %vm586_vm5, %v756_v26 }
 0x133   : > { %1495 = vmatmul.msk.bf16.vlgmr.msrb.gmra.mxu1 %vm586_vm5, %v696_v30 }
 0x134   : > { %1501 = vmatmul.msk.bf16.vlgmr.msra.gmra.mxu0 %vm586_vm5, %v810_v32  ;;  %961 = vmatpush.bf16.msrb.mxu1 %v952_v29 }
 0x13c   : > { %1504 = vmatmul.msk.bf16.vlgmr.msra.gmra.mxu2 %vm586_vm5, %v856_v40  ;;  %v1513_v40 = vld [vmem:[%s1871_s7 + $0x2] sm:$0x3] }
 0x13d   : > { %1132 = vmatpush.bf16.msra.mxu2 %v1123_v47 }
 0x140   : > { %1506 = vmatmul.msk.bf16.vlgmr.msra.gmra.mxu3 %vm586_vm5, %v889_v45  ;;  %v1044_v45 = vsel %vm565_vm2, %v1513_v40, 0 }
 0x141   : > { %1053 = vmatpush.bf16.msrb.mxu3 %v1044_v45 }
 0x143   : > { %1502 = vmatmul.msk.bf16.vlgmr.msra.gmra.mxu1 %vm586_vm5, %v794_v8 }
 0x144   : > { %1508 = vmatmul.msk.bf16.vlgmr.msrb.gmra.mxu0 %vm586_vm5, %v916_v46  ;;  %v1063_v46 = vsel %vm565_vm2, %v1025_v41, 0  ;;  %1099 = vmatpush.bf16.msra.mxu1 %v1090_v55 }
 0x145   : > { %1072 = vmatpush.bf16.msra.mxu0 %v1063_v46 }
 0x14c   : > { %1512 = vmatmul.msk.bf16.vlgmr.msrb.gmra.mxu2 %vm586_vm5, %v974_v53 }
 0x14d   : > { %1300 = vmatpush.bf16.msrb.mxu2 %v1291_v43 }
 0x153   : > { %1510 = vmatmul.msk.bf16.vlgmr.msrb.gmra.mxu1 %vm586_vm5, %v947_v56 }
 0x19f   : > { %v622_v57 = vpop.f32.mrf.mxu2 }
 0x1a0   : > { %v603_v58 = vpop.f32.mrf.mxu1 }
 0x1a1   : > { %v684_v60 = vpop.f32.mrf.mxu0  ;;  %v623_v61 = vadd.f32 %v622_v57, %v603_v58 }
 0x1a3   : > { %v650_v59 = vpop.f32.mrf.mxu3 }
 0x1a4   : > { %v655_v0 = vadd.f32 %v650_v59, %v623_v61 }
 0x1a6   : > { %v689_v6 = vadd.f32 %v684_v60, %v655_v0  ;;  %v1522_v0 = vld [vmem:[%s1871_s7 + $0xa] sm:$0x3] }
 0x1a7   : > { %v624_v62 = vpop.f32.mrf.mxu2 }
 0x1a8   : > { %v605_v63 = vpop.f32.mrf.mxu1 }
 0x1a9   : > { %v686_v3 = vpop.f32.mrf.mxu0  ;;  %v625_v4 = vadd.f32 %v624_v62, %v605_v63  ;;  %v1520_v63 = vld [vmem:[%s1871_s7 + $0x8] sm:$0x3] }
 0x1ab   : > { %v652_v1 = vpop.f32.mrf.mxu3 }
 0x1ac   : > { %v656_v9 = vadd.f32 %v652_v1, %v625_v4  ;;  %v1150_v4 = vsel %vm565_vm2, %v1520_v63, 0 }
 0x1ad   : > { %1159 = vmatpush.bf16.msra.mxu3 %v1150_v4 }
 0x1ae   : > { %v690_v16 = vadd.f32 %v686_v3, %v656_v9 }
 0x1af   : > { %v744_v5 = vpop.f32.mrf.mxu2 }
 0x1b0   : > { %v712_v7 = vpop.f32.mrf.mxu1 }
 0x1b1   : > { %v717_v8 = vadd.f32 %v712_v7, %v689_v6  ;;  %v826_v17 = vpop.f32.mrf.mxu0 }
 0x1b3   : > { %v749_v10 = vadd.f32 %v744_v5, %v717_v8  ;;  %v772_v11 = vpop.f32.mrf.mxu3  ;;  %v1181_v5 = vsel %vm565_vm2, %v1522_v0, 0 }
 0x1b4   : > { %1190 = vmatpush.bf16.msrb.mxu0 %v1181_v5 }
 0x1b5   : > { %v777_v13 = vadd.f32 %v772_v11, %v749_v10  ;;  %v1524_v11 = vld [vmem:[%s1871_s7 + $0xc] sm:$0x3] }
 0x1b7   : > { %v783_v14 = vadd.f32 %v1546_v12, %v777_v13  ;;  %v746_v15 = vpop.f32.mrf.mxu2 }
 0x1b8   : > { %v714_v18 = vpop.f32.mrf.mxu1 }
 0x1b9   : > { %v785_v19 = vmax.f32 %v783_v14, 0.0  ;;  %v718_v20 = vadd.f32 %v714_v18, %v690_v16  ;;  %v828_v29 = vpop.f32.mrf.mxu0  ;;  %v1208_v14 = vsel %vm565_vm2, %v1524_v11, 0 }
 0x1ba   : > { %1217 = vmatpush.bf16.msrb.mxu1 %v1208_v14 }
 0x1bb   : > { %v787_v21 = vmin.f32 %v785_v19, 6.0  ;;  %v750_v22 = vadd.f32 %v746_v15, %v718_v20  ;;  %v774_v23 = vpop.f32.mrf.mxu3  ;;  %v1238_v15 = vshrl.u32 %v1650_v2, 16  ;;  %v1241_v20 = vshll.u32 %v1650_v2, 16 }
 0x1bd   : > { %789 = vst.msk [vmem:[%s494_s18] sm:$0xff] %vm519_vm1, %v787_v21  ;;  %v778_v24 = vadd.f32 %v774_v23, %v750_v22  ;;  %v1240_v19 = vrot.slane %v1238_v15, 7 }
 0x1bf   : > { %v784_v25 = vadd.f32 %v1546_v12, %v778_v24  ;;  %v872_v26 = vpop.f32.mrf.mxu2  ;;  %v1243_v24 = vor.u32 %v1241_v20, %v1240_v19 }
 0x1c0   : > { %v845_v27 = vpop.f32.mrf.mxu1 }
 0x1c1   : > { %v786_v28 = vmax.f32 %v784_v25, 0.0  ;;  %v846_v31 = vadd.f32 %v845_v27, %v826_v17  ;;  %v932_v44 = vpop.f32.mrf.mxu0  ;;  %v1250_v27 = vsel %vm1248_vm14, %v1240_v19, 4286644096 }
 0x1c3   : > { %v788_v30 = vmin.f32 %v786_v28, 6.0  ;;  %v877_v32 = vadd.f32 %v872_v26, %v846_v31  ;;  %v905_v34 = vpop.f32.mrf.mxu3 }
 0x1c5   : > { %790 = vst.msk [vmem:[%s494_s18 + $0x8] sm:$0xff] %vm519_vm1, %v788_v30  ;;  %v910_v37 = vadd.f32 %v905_v34, %v877_v32  ;;  %v1253_v30 = vunpack.c.l.bf16 %v1250_v27  ;;  %v1549_v27 = vld [vmem:[%s1874_s10] ss:$0 sm:$0xff]  ;;  %s499_s18 = scalar_lea.vmem %s1877_s13, %s1657_s23 }
 0x1c7   : > { %v874_v33 = vpop.f32.mrf.mxu2  ;;  %v937_v49 = vadd.f32 %v932_v44, %v910_v37 }
 0x1c8   : > { %v847_v35 = vpop.f32.mrf.mxu1 }
 0x1c9   : > { %v848_v38 = vadd.f32 %v847_v35, %v828_v29  ;;  %v934_v60 = vpop.f32.mrf.mxu0  ;;  %v1249_v29 = vsel %vm1248_vm14, 4286644096, %v1243_v24 }
 0x1ca   : > { %v1251_v36 = vunpack.c.l.bf16 %v1249_v29  ;;  %v1252_v37 = vunpack.c.h.bf16 %v1249_v29 }
 0x1cb   : > { %v878_v48 = vadd.f32 %v874_v33, %v848_v38  ;;  %v907_v56 = vpop.f32.mrf.mxu3 }
 0x1cd   : > { %v911_v57 = vadd.f32 %v907_v56, %v878_v48 }
 0x1cf   : > { %v990_v50 = vpop.f32.mrf.mxu2  ;;  %v938_v61 = vadd.f32 %v934_v60, %v911_v57  ;;  %v1272_v60 = vrot.slane %v1251_v36, 2 }
 0x1d0   : > { %v963_v51 = vpop.f32.mrf.mxu1 }
 0x1d1   : > { %v968_v53 = vadd.f32 %v963_v51, %v937_v49  ;;  %v1258_v49 = vrot.slane %v1251_v36, 1  ;;  %v1261_v51 = vrot.slane %v1253_v30, 1 }
 0x1d3   : > { %v995_v58 = vadd.f32 %v990_v50, %v968_v53  ;;  %v1259_v50 = vrot.slane %v1252_v37, 1 }
 0x1d5   : > { %v1001_v59 = vadd.f32 %v1547_v54, %v995_v58  ;;  %v1262_v63 = vsel %vm631_vm6, %v1259_v50, %v1261_v51 }
 0x1d6   : > { %v1266_v4 = vmax.f32 %v1252_v37, %v1262_v63 }
 0x1d7   : > { %v1003_v1 = vmax.f32 %v1001_v59, 0.0  ;;  %v992_v6 = vpop.f32.mrf.mxu2  ;;  %v1275_v59 = vrot.slane %v1253_v30, 2 }
 0x1d8   : > { %v965_v62 = vpop.f32.mrf.mxu1 }
 0x1d9   : > { %v969_v3 = vadd.f32 %v965_v62, %v938_v61  ;;  %v1005_v8 = vmin.f32 %v1003_v1, 6.0  ;;  %v1273_v61 = vrot.slane %v1252_v37, 2  ;;  %v1260_v62 = vsel %vm631_vm6, %v1258_v49, %v1259_v50  ;;  %v1548_v37 = vld [vmem:[%s1872_s8] ss:$0 sm:$0xff] }
 0x1db   : > { %v996_v7 = vadd.f32 %v992_v6, %v969_v3  ;;  %v1007_v12 = vpack.c.bf16 %v1005_v8, %v1005_v8  ;;  %v1265_v3 = vmax.f32 %v1251_v36, %v1260_v62  ;;  %v1274_v5 = vsel %vm693_vm11, %v1272_v60, %v1273_v61 }
 0x1dc   : > { %v1276_v6 = vsel %vm693_vm11, %v1273_v61, %v1275_v59 }
 0x1dd   : > { %v1002_v9 = vadd.f32 %v1547_v54, %v996_v7  ;;  %v1011_v17 = vunpack.c.l.b16 %v1007_v12  ;;  %v1280_v11 = vmax.f32 %v1266_v4, %v1276_v6 }
 0x1df   : > { %v1004_v10 = vmax.f32 %v1002_v9, 0.0 }
 0x1e1   : > { %v1006_v13 = vmin.f32 %v1004_v10, 6.0  ;;  %v1279_v10 = vmax.f32 %v1265_v3, %v1274_v5 }
 0x1e3   : > { %v1008_v16 = vpack.c.bf16 %v1006_v13, %v1006_v13  ;;  %v1281_v15 = vpack.c.bf16 %v1280_v11, %v1279_v10 }
 0x1e5   : > { %v1012_v18 = vunpack.c.l.b16 %v1008_v16 }
 0x1e7   : > { %v1013_v21 = vpack.c.b16 %v1012_v18, %v1011_v17 }
 0x1e9   : > { %v1015_v22 = vshrl.u32 %v1013_v21, 16  ;;  %v1018_v23 = vshll.u32 %v1013_v21, 16 }
 0x1eb   : > { %v1017_v25 = vrot.slane %v1015_v22, 6  ;;  %v1020_v26 = vrot.slane %v1018_v23, 7 }
 0x1ed   : > { %v1021_v28 = vor.u32 %v1020_v26, %v1017_v25 }
 0x1ef   : > { %v1023_v31 = vsel %vm1701_vm4, 0, %v1021_v28  ;;  %v1024_v32 = vsel %vm1701_vm4, %v1021_v28, 0 }
 0x1f0   : > { %1515 = vmatmul.msk.bf16.vlgmr.msra.gmra.mxu0 %vm586_vm5, %v1023_v31  ;;  %v1083_v2 = vrot.slane %v1023_v31, 1  ;;  %v1084_v33 = vrot.slane %v1024_v32, 1  ;;  %v1029_v34 = vshrl.u32 %v1023_v31, 16  ;;  %v1031_v35 = vshll.u32 %v1023_v31, 16 }
 0x1f1   : > { %v1036_v38 = vshll.u32 %v1024_v32, 16  ;;  %v1113_v40 = vshrl.u32 %v1024_v32, 16  ;;  %v1201_v7 = vrot.slane %v1023_v31, 3  ;;  %v1202_v8 = vrot.slane %v1024_v32, 3 }
 0x1f2   : > { %v1085_v41 = vsel %vm631_vm6, %v1083_v2, %v1084_v33  ;;  %v1033_v42 = vrot.slane %v1031_v35, 1  ;;  %v1110_v43 = vrot.slane %v1029_v34, 1  ;;  %v1111_v44 = vrot.slane %v1031_v35, 2 }
 0x1f3   : > { %1517 = vmatmul.msk.bf16.vlgmr.msra.gmra.mxu1 %vm586_vm5, %v1085_v41  ;;  %v1115_v45 = vrot.slane %v1113_v40, 1  ;;  %v1116_v39 = vrot.slane %v1036_v38, 2  ;;  %v1038_v47 = vrot.slane %v1036_v38, 1  ;;  %v1170_v54 = vrot.slane %v1029_v34, 2 }
 0x1f4   : > { %v1034_v46 = vor.u32 %v1033_v42, %v1029_v34  ;;  %v1112_v48 = vor.u32 %v1111_v44, %v1110_v43  ;;  %v1171_v56 = vrot.slane %v1031_v35, 3  ;;  %v1173_v57 = vrot.slane %v1113_v40, 2 }
 0x1f5   : > { %v1117_v52 = vor.u32 %v1116_v39, %v1115_v45  ;;  %v1174_v58 = vrot.slane %v1036_v38, 3  ;;  %v1203_v12 = vsel %vm753_vm10, %v1201_v7, %v1202_v8  ;;  %v1143_v13 = vrot.slane %v1023_v31, 2 }
 0x1f6   : > { %v1039_v53 = vsel %vm573_vm7, %v1034_v46, %v1038_v47  ;;  %v1172_v0 = vor.u32 %v1171_v56, %v1170_v54  ;;  %v1144_v14 = vrot.slane %v1024_v32, 2 }
 0x1f7   : > { %1514 = vmatmul.msk.bf16.vlgmr.msrb.gmra.mxu3 %vm586_vm5, %v1039_v53  ;;  %v1118_v55 = vsel %vm659_vm8, %v1112_v48, %v1117_v52  ;;  %v1175_v1 = vor.u32 %v1174_v58, %v1173_v57 }
 0x1f8   : > { %1519 = vmatmul.msk.bf16.vlgmr.msra.gmra.mxu2 %vm586_vm5, %v1118_v55  ;;  %v1145_v16 = vsel %vm693_vm11, %v1143_v13, %v1144_v14 }
 0x1f9   : > { %v1176_v9 = vsel %vm721_vm9, %v1172_v0, %v1175_v1 }
 0x200   : > { %1523 = vmatmul.msk.bf16.vlgmr.msrb.gmra.mxu0 %vm586_vm5, %v1176_v9 }
 0x203   : > { %1525 = vmatmul.msk.bf16.vlgmr.msrb.gmra.mxu1 %vm586_vm5, %v1203_v12 }
 0x207   : > { %1521 = vmatmul.msk.bf16.vlgmr.msra.gmra.mxu3 %vm586_vm5, %v1145_v16 }
 0x208   : > { %1526 = vmatmul.msk.bf16.vlgmr.msrb.gmra.mxu2 %vm519_vm1, %v1281_v15 }
 0x26d   : > { %v1074_v17 = vpop.f32.mrf.mxu0 }
 0x270   : > { %v1101_v18 = vpop.f32.mrf.mxu1 }
 0x275   : > { %v1076_v21 = vpop.f32.mrf.mxu0 }
 0x278   : > { %v1103_v23 = vpop.f32.mrf.mxu1 }
 0x27a   : > { %v1055_v19 = vpop.f32.mrf.mxu3 }
 0x27b   : > { %v1134_v20 = vpop.f32.mrf.mxu2  ;;  %v1075_v22 = vadd.f32 %v1074_v17, %v1055_v19 }
 0x27d   : > { %v1106_v26 = vadd.f32 %v1101_v18, %v1075_v22  ;;  %v1192_v30 = vpop.f32.mrf.mxu0 }
 0x27f   : > { %v1139_v28 = vadd.f32 %v1134_v20, %v1106_v26 }
 0x280   : > { %v1219_v33 = vpop.f32.mrf.mxu1 }
 0x282   : > { %v1057_v24 = vpop.f32.mrf.mxu3 }
 0x283   : > { %v1136_v25 = vpop.f32.mrf.mxu2  ;;  %v1077_v29 = vadd.f32 %v1076_v21, %v1057_v24 }
 0x285   : > { %v1107_v35 = vadd.f32 %v1103_v23, %v1077_v29  ;;  %v1194_v47 = vpop.f32.mrf.mxu0 }
 0x287   : > { %v1140_v42 = vadd.f32 %v1136_v25, %v1107_v35 }
 0x288   : > { %v1221_v51 = vpop.f32.mrf.mxu1 }
 0x28a   : > { %v1161_v31 = vpop.f32.mrf.mxu3 }
 0x28b   : > { %v1166_v32 = vadd.f32 %v1161_v31, %v1139_v28  ;;  %v1302_v2 = vpop.f32.mrf.mxu2 }
 0x28c   : > { %v1303_v34 = vadd.f32 %v1549_v27, %v1302_v2 }
 0x28d   : > { %v1197_v36 = vadd.f32 %v1192_v30, %v1166_v32 }
 0x28e   : > { %v1307_v38 = vmax.f32 %v1303_v34, 0.0 }
 0x28f   : > { %v1224_v40 = vadd.f32 %v1219_v33, %v1197_v36 }
 0x290   : > { %v1309_v41 = vmin.f32 %v1307_v38, 6.0 }
 0x291   : > { %v1230_v43 = vadd.f32 %v1548_v37, %v1224_v40 }
 0x292   : > { %1311 = vst.msk [vmem:[%s504_s15] sm:$0xff] %vm519_vm1, %v1309_v41  ;;  %v1163_v44 = vpop.f32.mrf.mxu3 }
 0x293   : > { %v1232_v45 = vmax.f32 %v1230_v43, 0.0  ;;  %v1167_v39 = vadd.f32 %v1163_v44, %v1140_v42  ;;  %v1304_v46 = vpop.f32.mrf.mxu2 }
 0x294   : > { %v1305_v48 = vadd.f32 %v1549_v27, %v1304_v46 }
 0x295   : > { %v1234_v49 = vmin.f32 %v1232_v45, 6.0  ;;  %v1198_v50 = vadd.f32 %v1194_v47, %v1167_v39 }
 0x296   : > { %v1308_v52 = vmax.f32 %v1305_v48, 0.0 }
 0x297   : > { %1236 = vst.msk [vmem:[%s499_s18] sm:$0xff] %vm519_vm1, %v1234_v49  ;;  %v1225_v53 = vadd.f32 %v1221_v51, %v1198_v50 }
 0x298   : > { %v1310_v54 = vmin.f32 %v1308_v52, 6.0 }
 0x299   : > { %v1231_v55 = vadd.f32 %v1548_v37, %v1225_v53 }
 0x29a   : > { %1312 = vst.msk [vmem:[%s504_s15 + $0x8] sm:$0xff] %vm519_vm1, %v1310_v54 }
 0x29b   : > { %v1233_v56 = vmax.f32 %v1231_v55, 0.0 }
 0x29d   : > { %v1235_v57 = vmin.f32 %v1233_v56, 6.0 }
 0x29f   : > { %1237 = vst.msk [vmem:[%s499_s18 + $0x8] sm:$0xff] %vm519_vm1, %v1235_v57 }
 0x2a0 PF: > { %s25_s29 = sadd.s32 1, %s1556_s29  }
 0x2a1   : > { %p22_p4 = scmp.ge.s32.totalorder %s25_s29, 4  }
 0x2a3   :  { %24 = sbr.rel (!%p22_p4) target bundleno = 1 (0x1), region = 148 }

</bundles_post_ra>
